<compile_context>
chip_gen: v5e
topology: v5e:2x2
jax: 0.10.0
libtpu: 0.0.40
codegen_flags: <defaults>
</compile_context>

<pallas_src>
import jax
import jax.numpy as jnp
from jax.experimental import pallas as pl
from jax.experimental.pallas import tpu as pltpu


# ----------------------------- kernels ------------------------------------ #

def _fc_relu_kernel_inplace(x_ref, w_ref, b_ref, o_ref):
    # o_ref is float32 and its index_map ignores k -> block is VMEM-resident
    # across the K axis, so accumulate directly into it (no scratch copy).
    k = pl.program_id(2)

    @pl.when(k == 0)
    def _():
        o_ref[...] = jnp.zeros_like(o_ref)

    o_ref[...] += jnp.dot(
        x_ref[...], w_ref[...], preferred_element_type=jnp.float32
    )

    @pl.when(k == pl.num_programs(2) - 1)
    def _():
        o_ref[...] = jnp.maximum(o_ref[...] + b_ref[...], 0.0)


def _fc_relu_kernel_scratch(x_ref, w_ref, b_ref, o_ref, acc_ref):
    # Low-precision output path: f32 accumulator scratch, cast at the end.
    k = pl.program_id(2)

    @pl.when(k == 0)
    def _():
        acc_ref[...] = jnp.zeros_like(acc_ref)

    acc_ref[...] += jnp.dot(
        x_ref[...], w_ref[...], preferred_element_type=jnp.float32
    )

    @pl.when(k == pl.num_programs(2) - 1)
    def _():
        y = acc_ref[...] + b_ref[...]
        o_ref[...] = jnp.maximum(y, 0.0).astype(o_ref.dtype)


# ----------------------------- wrapper ------------------------------------ #

def _round_up(x, m):
    return (x + m - 1) // m * m


def _sublane(dtype):
    itm = jnp.dtype(dtype).itemsize
    if itm >= 4:
        return 8
    if itm == 2:
        return 16
    return 32


def _vmem_budget_bytes():
    # Generation-aware cap: ~80% of physical VMEM (v5e/v6e: 128 MiB, v7x: 64 MiB).
    try:
        cap = int(pltpu.get_tpu_info().vmem_capacity_bytes)
    except Exception:
        cap = 64 << 20
    return int(cap * 0.8)


def fully_connected_block(x, w, b, *, tile_b=None, tile_n=None, tile_k=None,
                          compute_dtype=None):
    """Forward of FullyConnectedBlock(in_size, out_size) with default args:
    y = ReLU(x @ W + b).  W is (in_size, out_size)."""
    B, In = x.shape
    In2, Out = w.shape
    assert In == In2 and b.shape == (Out,)

    out_dtype = x.dtype
    cdt = jnp.dtype(compute_dtype) if compute_dtype is not None else jnp.dtype(x.dtype)
    sub = _sublane(cdt)

    # Default tiles: the biggest MXU/lane-aligned tiles that fit the budget.
    tm = tile_b if tile_b is not None else min(_round_up(B, sub), 512)
    tn = tile_n if tile_n is not None else min(_round_up(Out, 128), 512)
    tk = tile_k if tile_k is not None else min(_round_up(In, 128), 2048)

    # Validate user-supplied tiles against the (sublane, 128) constraint.
    assert tm % sub == 0 and tn % 128 == 0 and tk % 128 == 0, (
        f"tiles must be multiples of ({sub}, 128, 128); got ({tm}, {tn}, {tk})")

    # Keep >=2 blocks along a "parallel" axis so both v7x TensorCores get work.
    if tile_b is None and tile_n is None:
        if _round_up(B, tm) // tm == 1 and _round_up(Out, tn) // tn == 1 and Out > 128:
            tn = max(128, _round_up(-(-Out // 2), 128))

    use_scratch = out_dtype != jnp.float32
    c_itm = cdt.itemsize
    o_itm = jnp.dtype(out_dtype).itemsize
    budget = _vmem_budget_bytes()

    def _need(tm_, tn_, tk_):
        n = (2 * tm_ * tk_ * c_itm          # x tiles (double-buffered)
             + 2 * tk_ * tn_ * c_itm        # weight tiles (dominant stream)
             + 2 * tn_ * 4                  # bias tiles (f32)
             + 2 * tm_ * tn_ * o_itm)       # output tiles
        if use_scratch:
            n += tm_ * tn_ * 4              # f32 accumulator scratch
        return n

    # Shrink default tiles if they would overflow the per-chip VMEM budget.
    if tile_b is None and tile_n is None and tile_k is None:
        while int(_need(tm, tn, tk) * 1.5) + (1 << 20) > budget and (
                tk > 128 or tn > 128 or tm > sub):
            if tk > 128:
                tk = max(128, _round_up(tk // 2, 128))
            elif tn > 128:
                tn = max(128, _round_up(tn // 2, 128))
            else:
                tm = max(sub, _round_up(tm // 2, sub))

    # Optional low-precision MXU compute (f32 accumulation preserved).
    xc = x.astype(cdt) if x.dtype != cdt else x
    wc = w.astype(cdt) if w.dtype != cdt else w

    Bp, Kp, Np = _round_up(B, tm), _round_up(In, tk), _round_up(Out, tn)

    # Padding is skipped entirely when dims are already tile-aligned.
    # TODO(synk): in production, pre-pad W/b once outside the hot path instead
    # of per call; only the ragged-batch pad of x belongs here.
    x_p = xc if (Bp == B and Kp == In) else jnp.pad(xc, ((0, Bp - B), (0, Kp - In)))
    w_p = wc if (Kp == In and Np == Out) else jnp.pad(wc, ((0, Kp - In), (0, Np - Out)))
    b_p = (b if Np == Out else jnp.pad(b, (0, Np - Out))).reshape(1, Np).astype(jnp.float32)

    grid = (Bp // tm, Np // tn, Kp // tk)

    vmem_bytes = min(max(int(_need(tm, tn, tk) * 1.5) + (1 << 20), 16 << 20), budget)

    cost = pl.CostEstimate(
        flops=2 * B * In * Out,
        transcendentals=0,
        bytes_accessed=(B * In * c_itm + In * Out * c_itm + Out * 4 + B * Out * o_itm),
    )

    kernel = _fc_relu_kernel_scratch if use_scratch else _fc_relu_kernel_inplace
    scratch = [pltpu.VMEM((tm, tn), jnp.float32)] if use_scratch else []

    out_p = pl.pallas_call(
        kernel,
        out_shape=jax.ShapeDtypeStruct((Bp, Np), out_dtype),
        grid_spec=pltpu.PrefetchScalarGridSpec(
            num_scalar_prefetch=0,
            grid=grid,
            in_specs=[
                pl.BlockSpec((tm, tk), lambda i, j, k: (i, k)),  # x tile
                pl.BlockSpec((tk, tn), lambda i, j, k: (k, j)),  # weight tile
                pl.BlockSpec((1, tn), lambda i, j, k: (0, j)),   # bias tile
            ],
            out_specs=pl.BlockSpec((tm, tn), lambda i, j, k: (i, j)),
            scratch_shapes=scratch,
        ),
        compiler_params=pltpu.CompilerParams(
            dimension_semantics=("parallel", "parallel", "arbitrary"),
            vmem_limit_bytes=vmem_bytes,
        ),
        cost_estimate=cost,
    )(x_p, w_p, b_p)

    # Skip the trailing slice (extra HBM copy) when already aligned.
    return out_p if (Bp == B and Np == Out) else out_p[:B, :Out]


def reference(x, w, b):
    return jnp.maximum(x @ w + b, 0.0)


if __name__ == "__main__":
    key = jax.random.PRNGKey(0)
    k1, k2, k3, k4, k5, k6 = jax.random.split(key, 6)

    # --- Small case consistent with nn.Linear(in_size=32, out_size=64) ----- #
    batch, in_size, out_size = 8, 32, 64
    x = jax.random.normal(k1, (batch, in_size), dtype=jnp.float32)
    w = jax.random.normal(k2, (in_size, out_size), dtype=jnp.float32) * 0.1
    b = jax.random.normal(k3, (out_size,), dtype=jnp.float32) * 0.1

    out = jax.block_until_ready(fully_connected_block(x, w, b))
    ref = reference(x, w, b)
    assert out.shape == (batch, out_size)
    assert jnp.allclose(out, ref, atol=1e-5, rtol=1e-5), "mismatch (small case)"

    # --- Multi-tile case: B/N/K tiling, K accumulation, ragged-batch pad --- #
    b2, i2, o2 = 200, 256, 384   # batch 200 is not a multiple of the 128 tile
    x2 = jax.random.normal(k4, (b2, i2), dtype=jnp.float32)
    w2 = jax.random.normal(k5, (i2, o2), dtype=jnp.float32) * 0.05
    bias2 = jax.random.normal(k6, (o2,), dtype=jnp.float32) * 0.05

    out2 = jax.block_until_ready(
        fully_connected_block(x2, w2, bias2, tile_b=128, tile_n=128, tile_k=128))
    ref2 = reference(x2, w2, bias2)
    assert out2.shape == (b2, o2)
    assert jnp.allclose(out2, ref2, atol=1e-4, rtol=1e-4), "mismatch (tiled case)"

    # --- bf16 MXU compute path (f32 accumulation), looser tolerance -------- #
    out3 = jax.block_until_ready(
        fully_connected_block(x2, w2, bias2, compute_dtype=jnp.bfloat16))
    assert out3.shape == (b2, o2)
    assert jnp.allclose(out3, ref2, atol=5e-2, rtol=5e-2), "mismatch (bf16 case)"

    # TODO(synk): normalization / dropout branches of FullyConnectedBlock are
    # disabled under the default constructor args and are not implemented here.
    print("KERNEL_OK")
</pallas_src>

<mosaic_0001>
module attributes {stable_mosaic.version = 11 : i64} {
  func.func @_fc_relu_kernel_inplace(%arg0: i32, %arg1: i32, %arg2: i32, %arg3: memref<8x128xf32, #tpu.memory_space<vmem>>, %arg4: memref<128x128xf32, #tpu.memory_space<vmem>>, %arg5: memref<1x128xf32, #tpu.memory_space<vmem>>, %arg6: memref<8x128xf32, #tpu.memory_space<vmem>>) attributes {dimension_semantics = [#tpu.dimension_semantics<parallel>, #tpu.dimension_semantics<parallel>, #tpu.dimension_semantics<arbitrary>], iteration_bounds = array<i64: 1, 1, 1>, scalar_prefetch = 0 : i64, scratch_operands = 0 : i64, tpu.core_type = #tpu.core_type<tc>, window_params = [{transform_indices = @transform_0, window_bounds = array<i64: 8, 128>}, {transform_indices = @transform_1, window_bounds = array<i64: 128, 128>}, {transform_indices = @transform_2, window_bounds = array<i64: 1, 128>}, {transform_indices = @transform_3, window_bounds = array<i64: 8, 128>}]} {
    %c0_i32 = arith.constant 0 : i32
    %0 = arith.cmpi eq, %arg2, %c0_i32 : i32
    %1 = arith.extui %0 : i1 to i32
    %c0_i32_0 = arith.constant 0 : i32
    %2 = arith.cmpi ne, %1, %c0_i32_0 : i32
    scf.if %2 {
      %cst_10 = arith.constant 0.000000e+00 : f32
      %12 = vector.broadcast %cst_10 : f32 to vector<8x128xf32>
      %c0_11 = arith.constant 0 : index
      %c0_12 = arith.constant 0 : index
      %13 = vector.load %arg6[%c0_11, %c0_12] : memref<8x128xf32, #tpu.memory_space<vmem>>, vector<8x128xf32>
      tpu.vector_store %arg6[%c0_11, %c0_12], %12 {strides = array<i32>} : memref<8x128xf32, #tpu.memory_space<vmem>>, vector<8x128xf32>,
    } else {
    }
    %c0 = arith.constant 0 : index
    %c0_1 = arith.constant 0 : index
    %3 = vector.load %arg6[%c0, %c0_1] : memref<8x128xf32, #tpu.memory_space<vmem>>, vector<8x128xf32>
    %c0_2 = arith.constant 0 : index
    %c0_3 = arith.constant 0 : index
    %4 = vector.load %arg3[%c0_2, %c0_3] : memref<8x128xf32, #tpu.memory_space<vmem>>, vector<8x128xf32>
    %c0_4 = arith.constant 0 : index
    %c0_5 = arith.constant 0 : index
    %5 = vector.load %arg4[%c0_4, %c0_5] : memref<128x128xf32, #tpu.memory_space<vmem>>, vector<128x128xf32>
    %cst = arith.constant dense<0.000000e+00> : vector<8x128xf32>
    %6 = tpu.matmul %4, %5, %cst {dimension_numbers = #tpu.dot_dimension_numbers<[1], [0], [0], [1], [0, 0, 1, 1], [], []>} : vector<8x128xf32>, vector<128x128xf32>, vector<8x128xf32> -> vector<8x128xf32>
    %7 = arith.addf %3, %6 : vector<8x128xf32>
    %c0_6 = arith.constant 0 : index
    %c0_7 = arith.constant 0 : index
    %8 = vector.load %arg6[%c0_6, %c0_7] : memref<8x128xf32, #tpu.memory_space<vmem>>, vector<8x128xf32>
    tpu.vector_store %arg6[%c0_6, %c0_7], %7 {strides = array<i32>} : memref<8x128xf32, #tpu.memory_space<vmem>>, vector<8x128xf32>,
    %c0_i32_8 = arith.constant 0 : i32
    %9 = arith.cmpi eq, %arg2, %c0_i32_8 : i32
    %10 = arith.extui %9 : i1 to i32
    %c0_i32_9 = arith.constant 0 : i32
    %11 = arith.cmpi ne, %10, %c0_i32_9 : i32
    scf.if %11 {
      %c0_10 = arith.constant 0 : index
      %c0_11 = arith.constant 0 : index
      %12 = vector.load %arg6[%c0_10, %c0_11] : memref<8x128xf32, #tpu.memory_space<vmem>>, vector<8x128xf32>
      %c0_12 = arith.constant 0 : index
      %c0_13 = arith.constant 0 : index
      %13 = vector.load %arg5[%c0_12, %c0_13] : memref<1x128xf32, #tpu.memory_space<vmem>>, vector<1x128xf32>
      %14 = vector.broadcast %13 : vector<1x128xf32> to vector<8x128xf32>
      %15 = arith.addf %12, %14 : vector<8x128xf32>
      %cst_14 = arith.constant 0.000000e+00 : f32
      %16 = vector.broadcast %cst_14 : f32 to vector<8x128xf32>
      %17 = arith.maximumf %15, %16 : vector<8x128xf32>
      %c0_15 = arith.constant 0 : index
      %c0_16 = arith.constant 0 : index
      %18 = vector.load %arg6[%c0_15, %c0_16] : memref<8x128xf32, #tpu.memory_space<vmem>>, vector<8x128xf32>
      tpu.vector_store %arg6[%c0_15, %c0_16], %17 {strides = array<i32>} : memref<8x128xf32, #tpu.memory_space<vmem>>, vector<8x128xf32>,
    } else {
    }
    return
  }
  func.func @transform_0(%arg0: i32, %arg1: i32, %arg2: i32) -> (i32, i32) {
    %c0_i32 = arith.constant 0 : i32
    return %arg0, %arg2 : i32, i32
  }
  func.func @transform_1(%arg0: i32, %arg1: i32, %arg2: i32) -> (i32, i32) {
    %c0_i32 = arith.constant 0 : i32
    return %arg2, %arg1 : i32, i32
  }
  func.func @transform_2(%arg0: i32, %arg1: i32, %arg2: i32) -> (i32, i32) {
    %c0_i32 = arith.constant 0 : i32
    %c0_i32_0 = arith.constant 0 : i32
    return %c0_i32, %arg1 : i32, i32
  }
  func.func @transform_3(%arg0: i32, %arg1: i32, %arg2: i32) -> (i32, i32) {
    %c0_i32 = arith.constant 0 : i32
    return %arg0, %arg1 : i32, i32
  }
}

</mosaic_0001>

<bundles_post_ra>
// kernel: tpu_custom_call.1
= control target key start
LH: loop header
LB: loop body
LE: loop exit
PB: predicated region body
PF: predicated region fallthrough
CT: control target
= control target key end

     0   :  { %8 = vsyncpa [#allocation3], 0  ;;  %s241_s0 = inlined_call_operand.hbm [shape: f32[8,128], index: 0, kind: input, shape index: {}]   ;;  %s242_s1 = inlined_call_operand.hbm [shape: f32[128,128], index: 1, kind: input, shape index: {}]   ;;  %s243_s2 = inlined_call_operand.vmem [shape: f32[1,128], index: 2, kind: input, shape index: {}]   ;;  %s244_s3 = inlined_call_operand.hbm [shape: f32[8,128], index: 3, kind: output, shape index: {}]  }
   0x1   :  { %9 = vsyncpa [#allocation6], 0 }
   0x2   :  { %10 = vsyncpa [#allocation4], 0  ;;  %s16_s14 = sshll.u32 %s241_s0, 4  ;;  %s204_s15 = smov [#allocation2]   ;;  %s17_s14 = int_to_ptr.hbm [resolvable:$true] %s16_s14 }
   0x3   :  { %s18_s16 = sshll.u32 %s204_s15, 4  ;;  %s26_s19 = sshll.u32 %s242_s1, 4  ;;  %s19_s16 = int_to_ptr.vmem [resolvable:$true] %s18_s16  ;;  %s27_s19 = int_to_ptr.hbm [resolvable:$true] %s26_s19 }
   0x4   :  { %21 = dma.hbm_to_vmem [thread:$0]  %s17_s14, 128, %s19_s16, [#allocation3]  }
   0x5   :  { %s205_s20 = smov [#allocation5]   ;;  %s206_s22 = smov 128  }
   0x6   :  { %s28_s21 = sshll.u32 %s205_s20, 4  ;;  %s207_s23 = smov 8   ;;  %s29_s21 = int_to_ptr.vmem [resolvable:$true] %s28_s21 }
   0x7   :  { %34 = dma.hbm_to_vmem [thread:$0]  %s27_s19, 2048, %s29_s21, [#allocation6], %s206_s22, %s206_s22, %s207_s23  }
   0x8   :  { %198 = dma.done.wait [#allocation3], 128  }
   0x9   :  { %199 = vsyncadd [#allocation3], 4294967168 }
   0xa   :  { %200 = dma.done.wait [#allocation6], 2048  }
   0xb   :  { %201 = vsyncadd [#allocation6], 4294965248  ;;  %v67_v0 = vld [vmem:[#allocation5 + $0x78] sm:$0xff]  ;;  %v66_v1 = vld [vmem:[#allocation5 + $0x70] sm:$0xff]  ;;  %s208_s24 = smov [#allocation7]   ;;  %s108_s28 = sshll.u32 %s244_s3, 4  ;;  %s109_s28 = int_to_ptr.hbm [resolvable:$true] %s108_s28 }
   0xc   :  { %68 = vmatpush.msra.mxu0 %v67_v0  ;;  %v65_v2 = vld [vmem:[#allocation5 + $0x68] sm:$0xff]  ;;  %v64_v3 = vld [vmem:[#allocation5 + $0x60] sm:$0xff]  ;;  %v63_v4 = vld [vmem:[#allocation5 + $0x58] sm:$0xff]  ;;  %s106_s25 = sshll.u32 %s208_s24, 4  ;;  %s107_s25 = int_to_ptr.vmem [resolvable:$true] %s106_s25 }
   0xd   :  { %v62_v5 = vld [vmem:[#allocation5 + $0x50] sm:$0xff]  ;;  %v61_v6 = vld [vmem:[#allocation5 + $0x48] sm:$0xff]  ;;  %v60_v7 = vld [vmem:[#allocation5 + $0x40] sm:$0xff] }
   0xe   :  { %69 = vmatpush.msra.mxu0 %v66_v1  ;;  %v59_v8 = vld [vmem:[#allocation5 + $0x38] sm:$0xff]  ;;  %v58_v9 = vld [vmem:[#allocation5 + $0x30] sm:$0xff]  ;;  %v57_v10 = vld [vmem:[#allocation5 + $0x28] sm:$0xff] }
   0xf   :  { %v56_v11 = vld [vmem:[#allocation5 + $0x20] sm:$0xff]  ;;  %v55_v12 = vld [vmem:[#allocation5 + $0x18] sm:$0xff]  ;;  %v54_v13 = vld [vmem:[#allocation5 + $0x10] sm:$0xff] }
  0x10   :  { %70 = vmatpush.msra.mxu0 %v65_v2  ;;  %v53_v14 = vld [vmem:[#allocation5 + $0x8] sm:$0xff]  ;;  %v52_v15 = vld [vmem:[#allocation5] sm:$0xff]  ;;  %v51_v16 = vld [vmem:[#allocation2] sm:$0xff] }
  0x11   :  { %v125_v17 = vld [vmem:[%s243_s2] ss:$0 sm:$0xff] }
  0x12   :  { %71 = vmatpush.msra.mxu0 %v64_v3 }
  0x14   :  { %72 = vmatpush.msra.mxu0 %v63_v4 }
  0x16   :  { %73 = vmatpush.msra.mxu0 %v62_v5 }
  0x18   :  { %74 = vmatpush.msra.mxu0 %v61_v6 }
  0x1a   :  { %75 = vmatpush.msra.mxu0 %v60_v7 }
  0x1c   :  { %76 = vmatpush.msra.mxu0 %v59_v8 }
  0x1e   :  { %77 = vmatpush.msra.mxu0 %v58_v9 }
  0x20   :  { %78 = vmatpush.msra.mxu0 %v57_v10 }
  0x22   :  { %79 = vmatpush.msra.mxu0 %v56_v11 }
  0x24   :  { %80 = vmatpush.msra.mxu0 %v55_v12 }
  0x26   :  { %81 = vmatpush.msra.mxu0 %v54_v13 }
  0x28   :  { %82 = vmatpush.msra.mxu0 %v53_v14 }
  0x2a   :  { %83 = vmatpush.msra.mxu0 %v52_v15 }
  0x2b   :  { %84 = vmatmul.f32.vlgmr.msra.gmra.mxu0 %v51_v16 }
  0xa8   :  { %v85_v18 = vpop.f32.mrf.mxu0 }
  0xa9   :  { %v98_v19 = vadd.f32 %v125_v17, %v85_v18 }
  0xab   :  { %v99_v20 = vmax.f32 %v98_v19, 0.0 }
  0xad   :  { %100 = vst [vmem:[#allocation7] sm:$0xff] %v99_v20 }
  0xae   :  { %111 = dma.vmem_to_hbm [thread:$0]  %s107_s25, 128, %s109_s28, [#allocation4]  }
  0xaf   :  { %202 = dma.done.wait [#allocation4], 128  }
  0xb0   :  { %203 = vsyncadd [#allocation4], 4294967168 }
  0xb1   :  { %116 = vsyncpa [#allocation3], 1 }
  0xb2   :  { %117 = vsyncpa [#allocation6], 1 }
  0xb3   :  { %118 = vsyncpa [#allocation4], 1 }

</bundles_post_ra>
